<compile_context>
chip_gen: v5e
topology: v5e:2x2
jax: 0.10.0
libtpu: 0.0.40
codegen_flags: <defaults>
</compile_context>

<pallas_src>
import functools

import jax
import jax.numpy as jnp
from jax.experimental import pallas as pl
from jax.experimental.pallas import tpu as pltpu


def _value_net_kernel(x_ref, w1_ref, b1_ref, w2_ref, b2_ref, out_ref):
    # Layer 1 on the MXU: (tb, obs) @ (obs, latent) -> (tb, latent), f32.
    h = jnp.dot(x_ref[...], w1_ref[...], preferred_element_type=jnp.float32)
    # Bias + ReLU on the VPU, in f32 (v5e-safe).
    h = jnp.maximum(h + b1_ref[...], 0.0)
    # Layer 2: w2_row (1, latent) contracted with h (tb, latent) along latent
    # -> (1, tb).  The transpose is folded into the matmul via the NT
    # dimension numbers, so the result lands with batch on the lane axis:
    # lane-dense row, unmasked vst and contiguous writeback when tb % 128 == 0,
    # and no 128x replicated slab / no explicit transpose op.
    v = jax.lax.dot_general(
        w2_ref[...], h,
        dimension_numbers=(((1,), (1,)), ((), ())),
        preferred_element_type=jnp.float32)
    v = v + b2_ref[0]                                  # scalar bias from SMEM
    # out_ref is (1, 1, tb); adding the leading unit dim is a free reshape.
    out_ref[...] = v.reshape(out_ref.shape).astype(out_ref.dtype)


@functools.partial(jax.jit, static_argnames=("block_b",))
def value_net_forward(x, w1, b1, w2, b2, *, block_b: int = 4096):
    """x: (B, obs_dim) f32; w1: (obs, latent); b1: (1, latent) or (latent,);
    w2: (latent, 1); b2: (1, 1) / (1,) / scalar.  Returns (B, 1) f32."""
    B, obs_dim = x.shape
    latent = w1.shape[1]

    # All-f32 path (matches the PyTorch module's numerics). These casts /
    # reshapes are metadata-only or tiny (weights are a few KiB).
    x = x.astype(jnp.float32)
    w1 = w1.astype(jnp.float32)
    b1 = b1.reshape(1, latent).astype(jnp.float32)
    w2_row = w2.reshape(1, latent).astype(jnp.float32)   # (latent,1) -> (1,latent)
    b2_flat = b2.reshape(1).astype(jnp.float32)          # 1-D scalar for SMEM

    if B <= block_b:
        # Single tile: block == full array, so no (8,128) divisibility
        # constraint, no padding, and only one grid step (per-step overhead
        # exceeds the actual compute for this tiny MLP).
        tb, grid_b = B, 1
    else:
        # Tile at block_b rows (multiple of 128 -> lane-dense output rows).
        # Ragged last block is masked by Pallas; no jnp.pad copy of x.
        # On v7x the "parallel" batch axis shards tiles across both TCs.
        tb = block_b
        grid_b = pl.cdiv(B, tb)

    out_rows = pl.pallas_call(
        _value_net_kernel,
        out_shape=jax.ShapeDtypeStruct((grid_b, 1, tb), jnp.float32),
        grid=(grid_b,),
        in_specs=[
            # x: tiled over batch only.
            pl.BlockSpec((tb, obs_dim), lambda i: (i, 0)),
            # Weights/biases: constant index_map -> VMEM-resident, DMA'd once.
            pl.BlockSpec((obs_dim, latent), lambda i: (0, 0)),
            pl.BlockSpec((1, latent), lambda i: (0, 0)),
            pl.BlockSpec((1, latent), lambda i: (0, 0)),
            # b2: single scalar kept as a 1-D SMEM array, read as b2_ref[0].
            pl.BlockSpec(memory_space=pltpu.MemorySpace.SMEM),
        ],
        out_specs=pl.BlockSpec((1, 1, tb), lambda i: (i, 0, 0)),
        compiler_params=pltpu.CompilerParams(
            dimension_semantics=("parallel",),
        ),
    )(x, w1, b1, w2_row, b2_flat)

    # (grid_b, 1, tb) flattens row-major in exact batch order; the reshape is
    # metadata-only and the slice drops the masked tail rows of a ragged grid.
    return out_rows.reshape(-1, 1)[:B]


def init_params(key, obs_dim, latent_dim):
    """Deterministic synthetic init mirroring nn.Linear shapes.
    PyTorch stores weight as (out, in); we keep (in, out) for x @ W."""
    k1, k2, k3, k4 = jax.random.split(key, 4)
    s1 = 1.0 / jnp.sqrt(obs_dim)
    s2 = 1.0 / jnp.sqrt(latent_dim)
    w1 = jax.random.uniform(k1, (obs_dim, latent_dim), jnp.float32, -s1, s1)
    b1 = jax.random.uniform(k2, (1, latent_dim), jnp.float32, -s1, s1)
    w2 = jax.random.uniform(k3, (latent_dim, 1), jnp.float32, -s2, s2)
    b2 = jax.random.uniform(k4, (1, 1), jnp.float32, -s2, s2)
    return w1, b1, w2, b2


if __name__ == "__main__":
    key = jax.random.PRNGKey(0)
    kx, kp = jax.random.split(key)

    # Small shapes consistent with the module: obs_dim from the env, default
    # latent_dim=64, small batch of observations.
    batch = 32
    obs_dim = 16       # env.observation_space.shape[0]
    latent_dim = 64    # default latent_dim

    x = jax.random.normal(kx, (batch, obs_dim), jnp.float32)
    w1, b1, w2, b2 = init_params(kp, obs_dim, latent_dim)

    out = jax.block_until_ready(value_net_forward(x, w1, b1, w2, b2))

    # Pure-f32 reference (force f32-accurate matmuls on the XLA side too).
    hi = jax.lax.Precision.HIGHEST
    h_ref = jnp.maximum(jnp.dot(x, w1, precision=hi) + b1, 0.0)
    ref = jnp.dot(h_ref, w2, precision=hi) + b2
    assert out.shape == (batch, 1)
    assert jnp.allclose(out, ref, atol=1e-4, rtol=1e-4)

    # Also exercise the tiled / ragged-batch path (grid > 1, last block masked
    # by Pallas instead of a jnp.pad copy of x).
    batch2 = 300
    x2 = jax.random.normal(kx, (batch2, obs_dim), jnp.float32)
    out2 = jax.block_until_ready(
        value_net_forward(x2, w1, b1, w2, b2, block_b=128))
    h2 = jnp.maximum(jnp.dot(x2, w1, precision=hi) + b1, 0.0)
    ref2 = jnp.dot(h2, w2, precision=hi) + b2
    assert out2.shape == (batch2, 1)
    assert jnp.allclose(out2, ref2, atol=1e-4, rtol=1e-4)

    print("KERNEL_OK")
</pallas_src>

<mosaic_0001>
module attributes {stable_mosaic.version = 11 : i64} {
  func.func @_value_net_kernel(%arg0: i32, %arg1: memref<32x16xf32, #tpu.memory_space<vmem>>, %arg2: memref<16x64xf32, #tpu.memory_space<vmem>>, %arg3: memref<1x64xf32, #tpu.memory_space<vmem>>, %arg4: memref<1x64xf32, #tpu.memory_space<vmem>>, %arg5: memref<1xf32, #tpu.memory_space<smem>>, %arg6: memref<1x1x32xf32, #tpu.memory_space<vmem>>) attributes {dimension_semantics = [#tpu.dimension_semantics<parallel>], iteration_bounds = array<i64: 1>, scalar_prefetch = 0 : i64, scratch_operands = 0 : i64, tpu.core_type = #tpu.core_type<tc>, window_params = [{transform_indices = @transform_0, window_bounds = array<i64: 32, 16>}, {pipeline_mode = #tpu.pipeline_mode<synchronous>, transform_indices = @transform_1, window_bounds = array<i64: 16, 64>}, {pipeline_mode = #tpu.pipeline_mode<synchronous>, transform_indices = @transform_2, window_bounds = array<i64: 1, 64>}, {pipeline_mode = #tpu.pipeline_mode<synchronous>, transform_indices = @transform_3, window_bounds = array<i64: 1, 64>}, {transform_indices = @transform_4, window_bounds = array<i64: 1>}, {transform_indices = @transform_5, window_bounds = array<i64: 1, 1, 32>}]} {
    %c0 = arith.constant 0 : index
    %c0_0 = arith.constant 0 : index
    %0 = vector.load %arg1[%c0, %c0_0] : memref<32x16xf32, #tpu.memory_space<vmem>>, vector<32x16xf32>
    %c0_1 = arith.constant 0 : index
    %c0_2 = arith.constant 0 : index
    %1 = vector.load %arg2[%c0_1, %c0_2] : memref<16x64xf32, #tpu.memory_space<vmem>>, vector<16x64xf32>
    %cst = arith.constant dense<0.000000e+00> : vector<32x64xf32>
    %2 = tpu.matmul %0, %1, %cst {dimension_numbers = #tpu.dot_dimension_numbers<[1], [0], [0], [1], [0, 0, 1, 1], [], []>} : vector<32x16xf32>, vector<16x64xf32>, vector<32x64xf32> -> vector<32x64xf32>
    %c0_3 = arith.constant 0 : index
    %c0_4 = arith.constant 0 : index
    %3 = vector.load %arg3[%c0_3, %c0_4] : memref<1x64xf32, #tpu.memory_space<vmem>>, vector<1x64xf32>
    %4 = vector.broadcast %3 : vector<1x64xf32> to vector<32x64xf32>
    %5 = arith.addf %2, %4 : vector<32x64xf32>
    %cst_5 = arith.constant 0.000000e+00 : f32
    %6 = vector.broadcast %cst_5 : f32 to vector<32x64xf32>
    %7 = arith.maximumf %5, %6 : vector<32x64xf32>
    %c0_6 = arith.constant 0 : index
    %c0_7 = arith.constant 0 : index
    %8 = vector.load %arg4[%c0_6, %c0_7] : memref<1x64xf32, #tpu.memory_space<vmem>>, vector<1x64xf32>
    %cst_8 = arith.constant dense<0.000000e+00> : vector<1x32xf32>
    %9 = tpu.matmul %8, %7, %cst_8 {dimension_numbers = #tpu.dot_dimension_numbers<[1], [1], [0], [0], [0, 0, 1, 0], [], []>} : vector<1x64xf32>, vector<32x64xf32>, vector<1x32xf32> -> vector<1x32xf32>
    %c0_9 = arith.constant 0 : index
    %10 = memref.load %arg5[%c0_9] : memref<1xf32, #tpu.memory_space<smem>>
    %11 = vector.broadcast %10 : f32 to vector<1x32xf32>
    %12 = arith.addf %9, %11 : vector<1x32xf32>
    %13 = vector.shape_cast %12 : vector<1x32xf32> to vector<1x1x32xf32>
    %c0_10 = arith.constant 0 : index
    %c0_11 = arith.constant 0 : index
    %c0_12 = arith.constant 0 : index
    %14 = vector.load %arg6[%c0_10, %c0_11, %c0_12] : memref<1x1x32xf32, #tpu.memory_space<vmem>>, vector<1x1x32xf32>
    tpu.vector_store %arg6[%c0_10, %c0_11, %c0_12], %13 {strides = array<i32>} : memref<1x1x32xf32, #tpu.memory_space<vmem>>, vector<1x1x32xf32>,
    return
  }
  func.func @transform_0(%arg0: i32) -> (i32, i32) {
    %c0_i32 = arith.constant 0 : i32
    %c0_i32_0 = arith.constant 0 : i32
    return %arg0, %c0_i32 : i32, i32
  }
  func.func @transform_1(%arg0: i32) -> (i32, i32) {
    %c0_i32 = arith.constant 0 : i32
    %c0_i32_0 = arith.constant 0 : i32
    %c0_i32_1 = arith.constant 0 : i32
    return %c0_i32, %c0_i32_0 : i32, i32
  }
  func.func @transform_2(%arg0: i32) -> (i32, i32) {
    %c0_i32 = arith.constant 0 : i32
    %c0_i32_0 = arith.constant 0 : i32
    %c0_i32_1 = arith.constant 0 : i32
    return %c0_i32, %c0_i32_0 : i32, i32
  }
  func.func @transform_3(%arg0: i32) -> (i32, i32) {
    %c0_i32 = arith.constant 0 : i32
    %c0_i32_0 = arith.constant 0 : i32
    %c0_i32_1 = arith.constant 0 : i32
    return %c0_i32, %c0_i32_0 : i32, i32
  }
  func.func @transform_4(%arg0: i32) -> i32 {
    %c0_i32 = arith.constant 0 : i32
    %c0_i32_0 = arith.constant 0 : i32
    return %c0_i32 : i32
  }
  func.func @transform_5(%arg0: i32) -> (i32, i32, i32) {
    %c0_i32 = arith.constant 0 : i32
    %c0_i32_0 = arith.constant 0 : i32
    %c0_i32_1 = arith.constant 0 : i32
    return %arg0, %c0_i32, %c0_i32_0 : i32, i32, i32
  }
}

</mosaic_0001>

<bundles_post_ra>
// kernel: value_net_forward.1
= control target key start
LH: loop header
LB: loop body
LE: loop exit
PB: predicated region body
PF: predicated region fallthrough
CT: control target
= control target key end

     0   :  { %vm32_vm0 = vcmask 130048   ;;  %s235_s0 = inlined_call_operand.vmem [shape: f32[32,16], index: 0, kind: input, shape index: {}]   ;;  %s236_s1 = inlined_call_operand.vmem [shape: f32[16,64], index: 1, kind: input, shape index: {}]   ;;  %s237_s2 = inlined_call_operand.vmem [shape: f32[1,64], index: 2, kind: input, shape index: {}]   ;;  %s238_s3 = inlined_call_operand.vmem [shape: f32[1,64], index: 3, kind: input, shape index: {}]   ;;  %s239_s4 = inlined_call_operand.<no memory space> [shape: f32[1], index: 4, kind: input, shape index: {}]   ;;  %s240_s5 = inlined_call_operand.hbm [shape: f32[1,1,32], index: 5, kind: output, shape index: {}]  }
   0x1   :  { %v27_v0 = vld [vmem:[%s236_s1 + $0x8] sm:$0xff]  ;;  %v26_v1 = vld [vmem:[%s236_s1] sm:$0xff]  ;;  %v24_v2 = vld [vmem:[%s235_s0 + $0x10] sm:$0xff] }
   0x2   :  { %144 = vmatpush.msra.mxu2 %v27_v0  ;;  %59 = vmatpush.msra.mxu0 %v27_v0  ;;  %v22_v3 = vld [vmem:[%s235_s0] sm:$0xff] }
   0x3   :  { %11 = vsyncpa [#allocation4], 0  ;;  %v25_v4 = vld [vmem:[%s235_s0 + $0x18] sm:$0xff]  ;;  %v23_v5 = vld [vmem:[%s235_s0 + $0x8] sm:$0xff]  ;;  %vm81_vm1 = vcmask 523264   ;;  %v80_v20 = vstv %s239_s4  ;;  %s174_s8 = smov [#allocation3]  }
   0x4   :  { %145 = vmatpush.msra.mxu2 %v26_v1  ;;  %60 = vmatpush.msra.mxu0 %v26_v1  ;;  %v147_v8 = vld [vmem:[%s237_s2] ss:$0 sm:$0xff]  ;;  %s124_s9 = sshll.u32 %s174_s8, 4  ;;  %s126_s12 = sshll.u32 %s240_s5, 4  ;;  %vm117_vm2 = vcmask 253952   ;;  %s125_s9 = int_to_ptr.vmem [resolvable:$true] %s124_s9  ;;  %s127_s12 = int_to_ptr.hbm [resolvable:$true] %s126_s12 }
   0x5   :  { %137 = vmatmul.msk.f32.vlgmr.msra.gmra.mxu2 %vm32_vm0, %v24_v2  ;;  %135 = vmatmul.msk.f32.vlgmr.msra.gmra.mxu0 %vm32_vm0, %v22_v3  ;;  %v78_v19 = vld [vmem:[%s238_s3] sm:$0x1] }
   0xd   :  { %138 = vmatmul.msk.f32.gmra.mxu2 %vm32_vm0, %v25_v4  ;;  %136 = vmatmul.msk.f32.gmra.mxu0 %vm32_vm0, %v23_v5 }
  0x82   :  { %v62_v7 = vpop.f32.mrf.mxu0 }
  0x83   :  { %v63_v17 = vadd.f32 %v147_v8, %v62_v7 }
  0x85   :  { %v74_v18 = vmax.f32 %v63_v17, 0.0 }
  0x88   :  { %v68_v6 = vpop.f32.mrf.mxu2 }
  0x89   :  { %v69_v12 = vadd.f32 %v147_v8, %v68_v6 }
  0x8a   :  { %v65_v11 = vpop.f32.mrf.mxu0 }
  0x8b   :  { %v66_v14 = vadd.f32 %v147_v8, %v65_v11  ;;  %v76_v15 = vmax.f32 %v69_v12, 0.0 }
  0x8d   :  { %v75_v16 = vmax.f32 %v66_v14, 0.0 }
  0x90   :  { %v71_v9 = vpop.f32.mrf.mxu2 }
  0x91   :  { %v72_v10 = vadd.f32 %v147_v8, %v71_v9 }
  0x93   :  { %v77_v13 = vmax.f32 %v72_v10, 0.0 }
  0x95   :  { %139 = vmatpush.xpose.msk.msra.mxu1 %vm81_vm1, %v77_v13 }
  0x99   :  { %140 = vmatpush.xpose.msk.msra.mxu1 %vm81_vm1, %v76_v15 }
  0x9d   :  { %141 = vmatpush.xpose.msk.msra.mxu1 %vm81_vm1, %v75_v16 }
  0xa1   :  { %142 = vmatpush.xpose.msk.msra.mxu1 %vm81_vm1, %v74_v18 }
  0xa4   :  { %143 = vmatmul.msk.f32.vlgmr.msra.gmra.mxu1 %vm81_vm1, %v78_v19 }
 0x121   :  { %v114_v21 = vpop.f32.mrf.mxu1 }
 0x122   :  { %v115_v22 = vadd.f32 %v114_v21, %v80_v20 }
 0x124   :  { %118 = vst.msk [vmem:[#allocation3] sm:$0x1] %vm117_vm2, %v115_v22 }
 0x125   :  { %129 = dma.vmem_to_hbm [thread:$0]  %s125_s9, 16, %s127_s12, [#allocation4]  }
 0x126   :  { %172 = dma.done.wait [#allocation4], 16  }
 0x127   :  { %173 = vsyncadd [#allocation4], 4294967280 }
 0x128   :  { %134 = vsyncpa [#allocation4], 1 }

</bundles_post_ra>
